<compile_context>
chip_gen: v7x
topology: tpu7x:2x2x1
jax: 0.10.0
libtpu: 0.0.40
codegen_flags: <defaults>
</compile_context>

<pallas_src>
import jax
import jax.numpy as jnp
from jax.experimental import pallas as pl
from jax.experimental.pallas import tpu as pltpu


def _cloud_side_kernel(x_ref, w_ref, b_ref, o_ref, acc_ref):
    # x_ref: [TB, C, TL] (native NCL tile)   w_ref: [C, CPAD]   b_ref: [1, CPAD]
    # o_ref: [TB, CPAD]                      acc_ref: VMEM [TB, C] f32
    l = pl.program_id(1)

    @pl.when(l == 0)
    def _():
        acc_ref[...] = jnp.zeros_like(acc_ref)

    # Partial sum over this L tile (cross-lane reduce; DMA is the binding
    # resource so the XLU work is free).  Upcast so bf16 inputs accumulate
    # in f32.
    acc_ref[...] += jnp.sum(x_ref[...].astype(jnp.float32), axis=-1)

    @pl.when(l == pl.num_programs(1) - 1)
    def _():
        # 1/L (true L) is folded into w_ref, so acc is effectively the mean.
        logits = jnp.dot(acc_ref[...], w_ref[...],
                         preferred_element_type=jnp.float32)
        o_ref[...] = (logits + b_ref[...]).astype(o_ref.dtype)


def _round_up(n, m):
    return ((n + m - 1) // m) * m


def resnet18_cloud_side_forward(x, fc_weight, fc_bias, *,
                                force_pallas=False,
                                min_pallas_bytes=1 << 20):
    """x: [B, 128, L], fc_weight: [classes, 128] (PyTorch layout), fc_bias: [classes]."""
    B, C, L = x.shape
    classes = fc_weight.shape[0]
    assert C == 128, "module forward assumes 128 * block.expansion channels"

    itemsize = jnp.dtype(x.dtype).itemsize

    # Tiny-input fallback: padding/launch overhead dominates below ~1 MiB.
    if not force_pallas and B * C * L * itemsize < min_pallas_bytes:
        pooled = jnp.mean(x.astype(jnp.float32), axis=-1)          # [B, C]
        return pooled @ fc_weight.astype(jnp.float32).T + fc_bias.astype(jnp.float32)

    # --- wrapper-side glue (layout plumbing, not compute hoisting) -----------
    cpad = max(128, _round_up(classes, 128))

    # Fold the 1/L mean (true L) into the tiny weight; pad classes lane-dense.
    w_t = (fc_weight.astype(jnp.float32).T) * (1.0 / L)             # [C, classes]
    w_p = jnp.zeros((C, cpad), jnp.float32).at[:, :classes].set(w_t)
    b_p = jnp.zeros((1, cpad), jnp.float32).at[0, :classes].set(
        fc_bias.astype(jnp.float32))

    # --- tile sizes -----------------------------------------------------------
    # Batch tile: >= 2 grid steps along the parallel axis when B >= 16 so both
    # v7x TensorCores get work; otherwise pad tiny batches up to 8 rows.
    if B >= 16:
        tb = min(256, max(8, ((B // 2) // 8) * 8))
    else:
        tb = 8
    Bp = _round_up(B, tb)

    # L tile: ~10 MiB per x buffer (double-buffered -> ~20 MiB), lane-aligned.
    budget = 10 * 1024 * 1024
    tl = max(128, (budget // (tb * C * itemsize)) // 128 * 128)
    tl = min(tl, _round_up(L, 128))
    Lp = _round_up(L, tl)

    # Zero-pad x to tile-aligned sizes (zeros don't change the sum; 1/L above
    # uses the true L).  No-op when already aligned.
    if (Bp, Lp) != (B, L):
        x_p = jnp.pad(x, ((0, Bp - B), (0, 0), (0, Lp - L)))
    else:
        x_p = x

    grid = (Bp // tb, Lp // tl)

    cost = pl.CostEstimate(
        flops=Bp * C * Lp + 2 * Bp * C * cpad,
        transcendentals=0,
        bytes_accessed=Bp * C * Lp * itemsize + C * cpad * 4 + cpad * 4 + Bp * cpad * 4,
    )

    out_padded = pl.pallas_call(
        _cloud_side_kernel,
        out_shape=jax.ShapeDtypeStruct((Bp, cpad), jnp.float32),
        grid_spec=pltpu.PrefetchScalarGridSpec(
            num_scalar_prefetch=0,
            grid=grid,
            in_specs=[
                pl.BlockSpec((tb, C, tl), lambda i, l: (i, 0, l)),   # x tile (NCL)
                pl.BlockSpec((C, cpad), lambda i, l: (0, 0)),        # weight (resident)
                pl.BlockSpec((1, cpad), lambda i, l: (0, 0)),        # bias (resident)
            ],
            out_specs=pl.BlockSpec((tb, cpad), lambda i, l: (i, 0)),
            scratch_shapes=[pltpu.VMEM((tb, C), jnp.float32)],
        ),
        compiler_params=pltpu.CompilerParams(
            dimension_semantics=("parallel", "arbitrary"),
            vmem_limit_bytes=48 << 20,   # fits v5e/v6e (128 MiB) and v7x (64 MiB)
        ),
        cost_estimate=cost,
    )(x_p, w_p, b_p)

    return out_padded[:B, :classes]


if __name__ == "__main__":
    key = jax.random.PRNGKey(0)
    k_x, k_w, k_b = jax.random.split(key, 3)

    B, C, L = 2, 128, 16          # input to the cloud-side model: [B, 128, L]
    classes = 10

    x = jax.random.normal(k_x, (B, C, L), dtype=jnp.float32)
    # PyTorch Linear stores weight as [out, in].
    fc_weight = jax.random.normal(k_w, (classes, C), dtype=jnp.float32) * (1.0 / jnp.sqrt(C))
    fc_bias = jax.random.normal(k_b, (classes,), dtype=jnp.float32) * 0.01

    # force_pallas=True so the Pallas path is exercised even at this tiny shape.
    y = resnet18_cloud_side_forward(x, fc_weight, fc_bias, force_pallas=True)
    y = jax.block_until_ready(y)

    # Pure-JAX reference check.
    ref = jnp.mean(x, axis=-1) @ fc_weight.T + fc_bias
    assert y.shape == (B, classes)
    assert jnp.allclose(y, ref, atol=1e-4, rtol=1e-4)

    print("KERNEL_OK")
</pallas_src>

<mosaic_0001>
module attributes {stable_mosaic.version = 11 : i64} {
  func.func @_cloud_side_kernel(%arg0: i32, %arg1: i32, %arg2: memref<8x128x128xf32, #tpu.memory_space<vmem>>, %arg3: memref<128x128xf32, #tpu.memory_space<vmem>>, %arg4: memref<1x128xf32, #tpu.memory_space<vmem>>, %arg5: memref<8x128xf32, #tpu.memory_space<vmem>>, %arg6: memref<8x128xf32, #tpu.memory_space<vmem>>) attributes {dimension_semantics = [#tpu.dimension_semantics<parallel>, #tpu.dimension_semantics<arbitrary>], iteration_bounds = array<i64: 1, 1>, scalar_prefetch = 0 : i64, scratch_operands = 1 : i64, tpu.core_type = #tpu.core_type<tc>, window_params = [{transform_indices = @transform_0, window_bounds = array<i64: 8, 128, 128>}, {pipeline_mode = #tpu.pipeline_mode<synchronous>, transform_indices = @transform_1, window_bounds = array<i64: 128, 128>}, {pipeline_mode = #tpu.pipeline_mode<synchronous>, transform_indices = @transform_2, window_bounds = array<i64: 1, 128>}, {transform_indices = @transform_3, window_bounds = array<i64: 8, 128>}]} {
    %c0_i32 = arith.constant 0 : i32
    %0 = arith.cmpi eq, %arg1, %c0_i32 : i32
    %1 = arith.extui %0 : i1 to i32
    %c0_i32_0 = arith.constant 0 : i32
    %2 = arith.cmpi ne, %1, %c0_i32_0 : i32
    scf.if %2 {
      %cst_9 = arith.constant 0.000000e+00 : f32
      %11 = vector.broadcast %cst_9 : f32 to vector<8x128xf32>
      %c0_10 = arith.constant 0 : index
      %c0_11 = arith.constant 0 : index
      %12 = vector.load %arg6[%c0_10, %c0_11] : memref<8x128xf32, #tpu.memory_space<vmem>>, vector<8x128xf32>
      tpu.vector_store %arg6[%c0_10, %c0_11], %11 {strides = array<i32>} : memref<8x128xf32, #tpu.memory_space<vmem>>, vector<8x128xf32>,
    } else {
    }
    %c0 = arith.constant 0 : index
    %c0_1 = arith.constant 0 : index
    %3 = vector.load %arg6[%c0, %c0_1] : memref<8x128xf32, #tpu.memory_space<vmem>>, vector<8x128xf32>
    %c0_2 = arith.constant 0 : index
    %c0_3 = arith.constant 0 : index
    %c0_4 = arith.constant 0 : index
    %4 = vector.load %arg2[%c0_2, %c0_3, %c0_4] : memref<8x128x128xf32, #tpu.memory_space<vmem>>, vector<8x128x128xf32>
    %cst = arith.constant dense<0.000000e+00> : vector<8x128xf32>
    %5 = vector.multi_reduction <add>, %4, %cst [2] : vector<8x128x128xf32> to vector<8x128xf32>
    %6 = arith.addf %3, %5 : vector<8x128xf32>
    %c0_5 = arith.constant 0 : index
    %c0_6 = arith.constant 0 : index
    %7 = vector.load %arg6[%c0_5, %c0_6] : memref<8x128xf32, #tpu.memory_space<vmem>>, vector<8x128xf32>
    tpu.vector_store %arg6[%c0_5, %c0_6], %6 {strides = array<i32>} : memref<8x128xf32, #tpu.memory_space<vmem>>, vector<8x128xf32>,
    %c0_i32_7 = arith.constant 0 : i32
    %8 = arith.cmpi eq, %arg1, %c0_i32_7 : i32
    %9 = arith.extui %8 : i1 to i32
    %c0_i32_8 = arith.constant 0 : i32
    %10 = arith.cmpi ne, %9, %c0_i32_8 : i32
    scf.if %10 {
      %c0_9 = arith.constant 0 : index
      %c0_10 = arith.constant 0 : index
      %11 = vector.load %arg6[%c0_9, %c0_10] : memref<8x128xf32, #tpu.memory_space<vmem>>, vector<8x128xf32>
      %c0_11 = arith.constant 0 : index
      %c0_12 = arith.constant 0 : index
      %12 = vector.load %arg3[%c0_11, %c0_12] : memref<128x128xf32, #tpu.memory_space<vmem>>, vector<128x128xf32>
      %cst_13 = arith.constant dense<0.000000e+00> : vector<8x128xf32>
      %13 = tpu.matmul %11, %12, %cst_13 {dimension_numbers = #tpu.dot_dimension_numbers<[1], [0], [0], [1], [0, 0, 1, 1], [], []>} : vector<8x128xf32>, vector<128x128xf32>, vector<8x128xf32> -> vector<8x128xf32>
      %c0_14 = arith.constant 0 : index
      %c0_15 = arith.constant 0 : index
      %14 = vector.load %arg4[%c0_14, %c0_15] : memref<1x128xf32, #tpu.memory_space<vmem>>, vector<1x128xf32>
      %15 = vector.broadcast %14 : vector<1x128xf32> to vector<8x128xf32>
      %16 = arith.addf %13, %15 : vector<8x128xf32>
      %c0_16 = arith.constant 0 : index
      %c0_17 = arith.constant 0 : index
      %17 = vector.load %arg5[%c0_16, %c0_17] : memref<8x128xf32, #tpu.memory_space<vmem>>, vector<8x128xf32>
      tpu.vector_store %arg5[%c0_16, %c0_17], %16 {strides = array<i32>} : memref<8x128xf32, #tpu.memory_space<vmem>>, vector<8x128xf32>,
    } else {
    }
    return
  }
  func.func @transform_0(%arg0: i32, %arg1: i32) -> (i32, i32, i32) {
    %c0_i32 = arith.constant 0 : i32
    %c0_i32_0 = arith.constant 0 : i32
    return %arg0, %c0_i32, %arg1 : i32, i32, i32
  }
  func.func @transform_1(%arg0: i32, %arg1: i32) -> (i32, i32) {
    %c0_i32 = arith.constant 0 : i32
    %c0_i32_0 = arith.constant 0 : i32
    %c0_i32_1 = arith.constant 0 : i32
    return %c0_i32, %c0_i32_0 : i32, i32
  }
  func.func @transform_2(%arg0: i32, %arg1: i32) -> (i32, i32) {
    %c0_i32 = arith.constant 0 : i32
    %c0_i32_0 = arith.constant 0 : i32
    %c0_i32_1 = arith.constant 0 : i32
    return %c0_i32, %c0_i32_0 : i32, i32
  }
  func.func @transform_3(%arg0: i32, %arg1: i32) -> (i32, i32) {
    %c0_i32 = arith.constant 0 : i32
    %c0_i32_0 = arith.constant 0 : i32
    return %arg0, %c0_i32 : i32, i32
  }
}

</mosaic_0001>

<bundles_post_ra>
// kernel: tpu_custom_call.1
= control target key start
LH: loop header
LB: loop body
LE: loop exit
PB: predicated region body
PF: predicated region fallthrough
CT: control target
= control target key end

     0   :  { %8 = vsyncpa [#allocation4], 0  ;;  %s1941_s0 = inlined_call_operand.hbm [shape: f32[8,128,128], index: 0, kind: input, shape index: {}]   ;;  %s1942_s1 = inlined_call_operand.hbm [shape: f32[128,128], index: 1, kind: input, shape index: {}]   ;;  %s1943_s2 = inlined_call_operand.vmem [shape: f32[1,128], index: 2, kind: input, shape index: {}]   ;;  %s1944_s3 = inlined_call_operand.hbm [shape: f32[8,128], index: 3, kind: output, shape index: {}]  }
   0x1   :  { %9 = vsyncpa [#allocation7], 0 }
   0x2   :  { %10 = vsyncpa [#allocation5], 0  ;;  %s1513_s12 = smov [#allocation3]   ;;  %s1441_s16 = scalar_lea.hbm %s1941_s0, 16384 }
   0x3   :  { %s16_s13 = sshll.u32 %s1513_s12, 4  ;;  %p1442_p0 = scmp.ne.s32.totalorder %s1941_s0, %s1441_s16  ;;  %s17_s13 = int_to_ptr.vmem [resolvable:$true] %s16_s13 }
   0x4   :  { %p1445_p1 = scmp.lt.u32.totalorder %s1441_s16, %s1941_s0 }
   0x6   :  { %p1447_p2 = pnand %p1445_p1, %p1442_p0 }
   0x8   :  { %1450 = shalt.err (!%p1447_p2)
}
   0x9   :  { %s1451_s21 = scalar_lea.vmem %s17_s13, 16384  ;;  %p1456_p4 = scmp.lt.s32.totalorder %s17_s13, %s17_s13 }
   0xa   :  { %p1452_p3 = scmp.ne.s32.totalorder %s17_s13, %s1451_s21  ;;  %p1457_p5 = scmp.lt.s32.totalorder %s1451_s21, %s1451_s21 }
   0xc   :  { %p1458_p6 = por %p1457_p5, %p1456_p4 }
   0xe   :  { %p1459_p7 = pnand %p1458_p6, %p1452_p3 }
  0x10   :  { %1462 = shalt.err (!%p1459_p7)
}
  0x11   :  { %s1514_s22 = smov 128   ;;  %s1515_s23 = smov 8  }
  0x12   :  { %22 = dma.hbm_to_vmem [thread:$0]  %s1941_s0, 16384, %s17_s13, [#allocation4], %s1514_s22, %s1514_s22, %s1515_s23  }
  0x13   :  { %s1516_s26 = smov [#allocation6]   ;;  %s1463_s30 = scalar_lea.hbm %s1942_s1, 2048 }
  0x14   :  { %s28_s27 = sshll.u32 %s1516_s26, 4  ;;  %p1464_p8 = scmp.ne.s32.totalorder %s1942_s1, %s1463_s30  ;;  %s29_s27 = int_to_ptr.vmem [resolvable:$true] %s28_s27 }
  0x15   :  { %p1467_p9 = scmp.lt.u32.totalorder %s1463_s30, %s1942_s1 }
  0x17   :  { %p1469_p10 = pnand %p1467_p9, %p1464_p8 }
  0x19   :  { %1472 = shalt.err (!%p1469_p10)
}
  0x1a   :  { %s1473_s8 = scalar_lea.vmem %s29_s27, 2048  ;;  %p1478_p12 = scmp.lt.s32.totalorder %s29_s27, %s29_s27 }
  0x1b   :  { %p1474_p11 = scmp.ne.s32.totalorder %s29_s27, %s1473_s8  ;;  %p1479_p13 = scmp.lt.s32.totalorder %s1473_s8, %s1473_s8 }
  0x1d   :  { %p1480_p0 = por %p1479_p13, %p1478_p12 }
  0x1f   :  { %p1481_p1 = pnand %p1480_p0, %p1474_p11 }
  0x21   :  { %1484 = shalt.err (!%p1481_p1)
}
  0x22   :  { %34 = dma.hbm_to_vmem [thread:$0]  %s1942_s1, 2048, %s29_s27, [#allocation7], %s1514_s22, %s1514_s22, %s1515_s23  }
  0x23   :  { %1507 = dma.done.wait [#allocation4], 16384  }
  0x24   :  { %1508 = vsyncadd [#allocation4], 4294950912 }
  0x25   :  { %1509 = dma.done.wait [#allocation7], 2048  }
  0x26   :  { %1510 = vsyncadd [#allocation7], 4294965248  ;;  %v65_v0 = vld [vmem:[#allocation3 + $0x80] sm:$0xff]  ;;  %v66_v2 = vld [vmem:[#allocation3 + $0x88] sm:$0xff]  ;;  %vm572_vm0 = vcmask 130112   ;;  %vm579_vm1 = vcmask 195712  }
  0x27   :  { %v49_v1 = vld [vmem:[#allocation3] sm:$0xff]  ;;  %209 = vadd.xlane.f32.xlu1 %v65_v0  ;;  %v50_v3 = vld [vmem:[#allocation3 + $0x8] sm:$0xff]  ;;  %v67_v4 = vld [vmem:[#allocation3 + $0x90] sm:$0xff]  ;;  %vm586_vm2 = vcmask 261312   ;;  %vm593_vm3 = vcmask 326912   ;;  %vm600_vm4 = vcmask 392512  }
  0x28   :  { %177 = vadd.xlane.f32.xlu0 %v49_v1  ;;  %v51_v5 = vld [vmem:[#allocation3 + $0x10] sm:$0xff]  ;;  %v82_v6 = vld [vmem:[#allocation3 + $0x108] sm:$0xff]  ;;  %v81_v7 = vld [vmem:[#allocation3 + $0x100] sm:$0xff]  ;;  %vm607_vm5 = vcmask 458112   ;;  %vm614_vm6 = vcmask 523712   ;;  %vm621_vm7 = vcmask 589312  }
  0x29   :  { %v68_v8 = vld [vmem:[#allocation3 + $0x98] sm:$0xff]  ;;  %v97_v10 = vld [vmem:[#allocation3 + $0x180] sm:$0xff]  ;;  %v83_v11 = vld [vmem:[#allocation3 + $0x110] sm:$0xff]  ;;  %vm628_vm8 = vcmask 654912   ;;  %vm635_vm9 = vcmask 720512   ;;  %vm1518_vm10 = vmmov 0  }
  0x2a   :  { %v52_v9 = vld [vmem:[#allocation3 + $0x18] sm:$0xff]  ;;  %v53_v12 = vld [vmem:[#allocation3 + $0x20] sm:$0xff]  ;;  %v98_v13 = vld [vmem:[#allocation3 + $0x188] sm:$0xff]  ;;  %vm642_vm11 = vcmask 786112   ;;  %vm649_vm12 = vcmask 851712   ;;  %vm656_vm13 = vcmask 917312  }
  0x2b   :  { %211 = vadd.xlane.f32.xlu1 %v66_v2  ;;  %v84_v14 = vld [vmem:[#allocation3 + $0x118] sm:$0xff]  ;;  %v69_v15 = vld [vmem:[#allocation3 + $0xa0] sm:$0xff]  ;;  %v99_v17 = vld [vmem:[#allocation3 + $0x190] sm:$0xff]  ;;  %vm663_vm14 = vcmask 982912   ;;  %vm670_vm15 = vcmask 1048512   ;;  %s1520_s11 = smov [#allocation8]  }
  0x2c   :  { %179 = vadd.xlane.f32.xlu0 %v50_v3  ;;  %v113_v16 = vld [vmem:[#allocation3 + $0x200] sm:$0xff]  ;;  %v54_v18 = vld [vmem:[#allocation3 + $0x28] sm:$0xff]  ;;  %v115_v22 = vld [vmem:[#allocation3 + $0x210] sm:$0xff]  ;;  %s1346_s12 = sshll.u32 %s1520_s11, 4  ;;  %s1347_s12 = int_to_ptr.vmem [resolvable:$true] %s1346_s12 }
  0x2d   :  { %v114_v19 = vld [vmem:[#allocation3 + $0x208] sm:$0xff]  ;;  %v85_v20 = vld [vmem:[#allocation3 + $0x120] sm:$0xff]  ;;  %v100_v23 = vld [vmem:[#allocation3 + $0x198] sm:$0xff]  ;;  %s1485_s13 = scalar_lea.vmem %s1347_s12, 128  ;;  %p1490_p3 = scmp.lt.s32.totalorder %s1347_s12, %s1347_s12 }
  0x2e   :  { %v70_v21 = vld [vmem:[#allocation3 + $0xa8] sm:$0xff]  ;;  %v129_v25 = vld [vmem:[#allocation3 + $0x280] sm:$0xff]  ;;  %v71_v26 = vld [vmem:[#allocation3 + $0xb0] sm:$0xff]  ;;  %p1486_p2 = scmp.ne.s32.totalorder %s1347_s12, %s1485_s13  ;;  %p1491_p4 = scmp.lt.s32.totalorder %s1485_s13, %s1485_s13 }
  0x2f   :  { %213 = vadd.xlane.f32.xlu1 %v67_v4  ;;  %v130_v24 = vld [vmem:[#allocation3 + $0x288] sm:$0xff]  ;;  %v55_v27 = vld [vmem:[#allocation3 + $0x30] sm:$0xff]  ;;  %v101_v28 = vld [vmem:[#allocation3 + $0x1a0] sm:$0xff]  ;;  %v561_v4 = vlaneseq }
  0x30   :  { %181 = vadd.xlane.f32.xlu0 %v51_v5  ;;  %v86_v29 = vld [vmem:[#allocation3 + $0x128] sm:$0xff]  ;;  %v131_v30 = vld [vmem:[#allocation3 + $0x290] sm:$0xff]  ;;  %v116_v31 = vld [vmem:[#allocation3 + $0x218] sm:$0xff]  ;;  %p1492_p5 = por %p1491_p4, %p1490_p3 }
  0x31   :  { %v146_v32 = vld [vmem:[#allocation3 + $0x308] sm:$0xff]  ;;  %v145_v33 = vld [vmem:[#allocation3 + $0x300] sm:$0xff]  ;;  %v72_v34 = vld [vmem:[#allocation3 + $0xb8] sm:$0xff] }
  0x32   :  { %v56_v35 = vld [vmem:[#allocation3 + $0x38] sm:$0xff]  ;;  %v102_v36 = vld [vmem:[#allocation3 + $0x1a8] sm:$0xff]  ;;  %v87_v37 = vld [vmem:[#allocation3 + $0x130] sm:$0xff]  ;;  %p1493_p6 = pnand %p1492_p5, %p1486_p2 }
  0x33   :  { %243 = vadd.xlane.f32.xlu1 %v82_v6  ;;  %v132_v38 = vld [vmem:[#allocation3 + $0x298] sm:$0xff]  ;;  %v117_v39 = vld [vmem:[#allocation3 + $0x220] sm:$0xff]  ;;  %v147_v41 = vld [vmem:[#allocation3 + $0x310] sm:$0xff] }
  0x34   :  { %241 = vadd.xlane.f32.xlu0 %v81_v7  ;;  %v161_v40 = vld [vmem:[#allocation3 + $0x380] sm:$0xff]  ;;  %v162_v43 = vld [vmem:[#allocation3 + $0x388] sm:$0xff]  ;;  %v88_v44 = vld [vmem:[#allocation3 + $0x138] sm:$0xff]  ;;  %v1565_v7 = vand.u32 127, %v561_v4 }
  0x35   :  { %v57_v42 = vld [vmem:[#allocation3 + $0x40] sm:$0xff]  ;;  %v118_v46 = vld [vmem:[#allocation3 + $0x228] sm:$0xff]  ;;  %v103_v47 = vld [vmem:[#allocation3 + $0x1b0] sm:$0xff] }
  0x36   :  { %v73_v45 = vld [vmem:[#allocation3 + $0xc0] sm:$0xff]  ;;  %v148_v48 = vld [vmem:[#allocation3 + $0x318] sm:$0xff]  ;;  %v58_v50 = vld [vmem:[#allocation3 + $0x48] sm:$0xff] }
  0x37   :  { %215 = vadd.xlane.f32.xlu1 %v68_v8  ;;  %v133_v49 = vld [vmem:[#allocation3 + $0x2a0] sm:$0xff]  ;;  %v163_v51 = vld [vmem:[#allocation3 + $0x390] sm:$0xff]  ;;  %v74_v53 = vld [vmem:[#allocation3 + $0xc8] sm:$0xff] }
  0x38   :  { %183 = vadd.xlane.f32.xlu0 %v52_v9  ;;  %v89_v52 = vld [vmem:[#allocation3 + $0x140] sm:$0xff]  ;;  %v119_v54 = vld [vmem:[#allocation3 + $0x230] sm:$0xff]  ;;  %v104_v55 = vld [vmem:[#allocation3 + $0x1b8] sm:$0xff] }
  0x39   :  { %v149_v56 = vld [vmem:[#allocation3 + $0x320] sm:$0xff]  ;;  %v134_v57 = vld [vmem:[#allocation3 + $0x2a8] sm:$0xff]  ;;  %v59_v58 = vld [vmem:[#allocation3 + $0x50] sm:$0xff] }
  0x3a   :  { %v164_v59 = vld [vmem:[#allocation3 + $0x398] sm:$0xff]  ;;  %v90_v60 = vld [vmem:[#allocation3 + $0x148] sm:$0xff]  ;;  %v75_v61 = vld [vmem:[#allocation3 + $0xd0] sm:$0xff] }
  0x3b   :  { %273 = vadd.xlane.f32.xlu1 %v97_v10  ;;  %v120_v62 = vld [vmem:[#allocation3 + $0x238] sm:$0xff]  ;;  %v105_v63 = vld [vmem:[#allocation3 + $0x1c0] sm:$0xff]  ;;  %v150_v0 = vld [vmem:[#allocation3 + $0x328] sm:$0xff]  ;;  %v1567_v10 = vshrl.u32 %v561_v4, 7 }
  0x3c   :  { %245 = vadd.xlane.f32.xlu0 %v83_v11  ;;  %v135_v1 = vld [vmem:[#allocation3 + $0x2b0] sm:$0xff]  ;;  %v60_v2 = vld [vmem:[#allocation3 + $0x58] sm:$0xff]  ;;  %v165_v3 = vld [vmem:[#allocation3 + $0x3a0] sm:$0xff]  ;;  %v567_v11 = vadd.s32 4294967288, %v1565_v7 }
  0x3d   :  { %v91_v5 = vld [vmem:[#allocation3 + $0x150] sm:$0xff]  ;;  %v76_v6 = vld [vmem:[#allocation3 + $0xd8] sm:$0xff]  ;;  %v121_v8 = vld [vmem:[#allocation3 + $0x240] sm:$0xff] }
  0x3e   :  { %v106_v9 = vld [vmem:[#allocation3 + $0x1c8] sm:$0xff] }
  0x3f   :  { %185 = vadd.xlane.f32.xlu1 %v53_v12 }
  0x40   :  { %275 = vadd.xlane.f32.xlu0 %v98_v13 }
  0x43   :  { %247 = vadd.xlane.f32.xlu1 %v84_v14  ;;  %v151_v14 = vld [vmem:[#allocation3 + $0x330] sm:$0xff] }
  0x44   :  { %217 = vadd.xlane.f32.xlu0 %v69_v15  ;;  %v136_v15 = vld [vmem:[#allocation3 + $0x2b8] sm:$0xff] }
  0x47   :  { %305 = vadd.xlane.f32.xlu1 %v113_v16  ;;  %v574_v16 = vadd.s32 4294967280, %v1565_v7 }
  0x48   :  { %277 = vadd.xlane.f32.xlu0 %v99_v17  ;;  %v1573_v17 = vsub.s32 %v1565_v7, %v1567_v10 }
  0x4b   :  { %187 = vadd.xlane.f32.xlu1 %v54_v18  ;;  %v1576_v18 = vsub.s32 %v567_v11, %v1567_v10 }
  0x4c   :  { %307 = vadd.xlane.f32.xlu0 %v114_v19 }
  0x4f   :  { %249 = vadd.xlane.f32.xlu1 %v85_v20 }
  0x50   :  { %219 = vadd.xlane.f32.xlu0 %v70_v21  ;;  %v61_v21 = vld [vmem:[#allocation3 + $0x60] sm:$0xff] }
  0x53   :  { %309 = vadd.xlane.f32.xlu1 %v115_v22  ;;  %v166_v22 = vld [vmem:[#allocation3 + $0x3a8] sm:$0xff] }
  0x54   :  { %279 = vadd.xlane.f32.xlu0 %v100_v23  ;;  %v1579_v23 = vsub.s32 %v574_v16, %v1567_v10  ;;  %v595_v16 = vadd.s32 4294967256, %v1565_v7 }
  0x57   :  { %339 = vadd.xlane.f32.xlu1 %v130_v24 }
  0x58   :  { %337 = vadd.xlane.f32.xlu0 %v129_v25 }
  0x5b   :  { %221 = vadd.xlane.f32.xlu1 %v71_v26 }
  0x5c   :  { %189 = vadd.xlane.f32.xlu0 %v55_v27 }
  0x5f   :  { %281 = vadd.xlane.f32.xlu1 %v101_v28 }
  0x60   :  { %251 = vadd.xlane.f32.xlu0 %v86_v29 }
  0x63   :  { %341 = vadd.xlane.f32.xlu1 %v131_v30 }
  0x64   :  { %311 = vadd.xlane.f32.xlu0 %v116_v31 }
  0x67   :  { %371 = vadd.xlane.f32.xlu1 %v146_v32  ;;  %v92_v32 = vld [vmem:[#allocation3 + $0x158] sm:$0xff] }
  0x68   :  { %369 = vadd.xlane.f32.xlu0 %v145_v33  ;;  %v77_v33 = vld [vmem:[#allocation3 + $0xe0] sm:$0xff] }
  0x6b   :  { %223 = vadd.xlane.f32.xlu1 %v72_v34 }
  0x6c   :  { %191 = vadd.xlane.f32.xlu0 %v56_v35 }
  0x6f   :  { %283 = vadd.xlane.f32.xlu1 %v102_v36  ;;  %v581_v36 = vadd.s32 4294967272, %v1565_v7 }
  0x70   :  { %253 = vadd.xlane.f32.xlu0 %v87_v37 }
  0x73   :  { %343 = vadd.xlane.f32.xlu1 %v132_v38 }
  0x74   :  { %313 = vadd.xlane.f32.xlu0 %v117_v39 }
  0x77   :  { %401 = vadd.xlane.f32.xlu1 %v161_v40 }
  0x78   :  { %373 = vadd.xlane.f32.xlu0 %v147_v41  ;;  %v122_v41 = vld [vmem:[#allocation3 + $0x248] sm:$0xff] }
  0x7b   :  { %193 = vadd.xlane.f32.xlu1 %v57_v42  ;;  %v107_v42 = vld [vmem:[#allocation3 + $0x1d0] sm:$0xff] }
  0x7c   :  { %403 = vadd.xlane.f32.xlu0 %v162_v43 }
  0x7f   :  { %255 = vadd.xlane.f32.xlu1 %v88_v44 }
  0x80   :  { %225 = vadd.xlane.f32.xlu0 %v73_v45  ;;  %v1595_v45 = vsub.s32 %v581_v36, %v1567_v10 }
  0x83   :  { %315 = vadd.xlane.f32.xlu1 %v118_v46 }
  0x84   :  { %285 = vadd.xlane.f32.xlu0 %v103_v47 }
  0x87   :  { %375 = vadd.xlane.f32.xlu1 %v148_v48 }
  0x88   :  { %345 = vadd.xlane.f32.xlu0 %v133_v49  ;;  %v152_v49 = vld [vmem:[#allocation3 + $0x338] sm:$0xff] }
  0x8b   :  { %195 = vadd.xlane.f32.xlu1 %v58_v50  ;;  %v137_v50 = vld [vmem:[#allocation3 + $0x2c0] sm:$0xff] }
  0x8c   :  { %405 = vadd.xlane.f32.xlu0 %v163_v51 }
  0x8f   :  { %257 = vadd.xlane.f32.xlu1 %v89_v52 }
  0x90   :  { %227 = vadd.xlane.f32.xlu0 %v74_v53  ;;  %v588_v53 = vadd.s32 4294967264, %v1565_v7 }
  0x93   :  { %317 = vadd.xlane.f32.xlu1 %v119_v54 }
  0x94   :  { %287 = vadd.xlane.f32.xlu0 %v104_v55 }
  0x97   :  { %377 = vadd.xlane.f32.xlu1 %v149_v56 }
  0x98   :  { %347 = vadd.xlane.f32.xlu0 %v134_v57 }
  0x9b   :  { %197 = vadd.xlane.f32.xlu1 %v59_v58  ;;  %v62_v58 = vld [vmem:[#allocation3 + $0x68] sm:$0xff] }
  0x9c   :  { %407 = vadd.xlane.f32.xlu0 %v164_v59  ;;  %v167_v59 = vld [vmem:[#allocation3 + $0x3b0] sm:$0xff] }
  0x9f   :  { %259 = vadd.xlane.f32.xlu1 %v90_v60 }
  0xa0   :  { %229 = vadd.xlane.f32.xlu0 %v75_v61  ;;  %v1605_v61 = vsub.s32 %v588_v53, %v1567_v10  ;;  %v602_v53 = vadd.s32 4294967248, %v1565_v7 }
  0xa3   :  { %319 = vadd.xlane.f32.xlu1 %v120_v62 }
  0xa4   :  { %289 = vadd.xlane.f32.xlu0 %v105_v63 }
  0xa7   :  { %379 = vadd.xlane.f32.xlu1 %v150_v0 }
  0xa8   :  { %349 = vadd.xlane.f32.xlu0 %v135_v1  ;;  %v93_v1 = vld [vmem:[#allocation3 + $0x160] sm:$0xff] }
  0xab   :  { %199 = vadd.xlane.f32.xlu1 %v60_v2  ;;  %v78_v2 = vld [vmem:[#allocation3 + $0xe8] sm:$0xff] }
  0xac   :  { %409 = vadd.xlane.f32.xlu0 %v165_v3 }
  0xaf   :  { %261 = vadd.xlane.f32.xlu1 %v91_v5 }
  0xb0   :  { %231 = vadd.xlane.f32.xlu0 %v76_v6 }
  0xb3   :  { %321 = vadd.xlane.f32.xlu1 %v121_v8 }
  0xb4   :  { %291 = vadd.xlane.f32.xlu0 %v106_v9  ;;  %v210_v12 = vpop.xlane.xlu1 %209 }
  0xb5   :  { %v178_v13 = vpop.xlane.xlu0 %177  ;;  %v675_v24 = vrot.slane %v210_v12, %v1573_v17  ;;  %v123_v12 = vld [vmem:[#allocation3 + $0x250] sm:$0xff] }
  0xb6   :  { %v566_v25 = vrot.slane %v178_v13, %v1573_v17  ;;  %v108_v13 = vld [vmem:[#allocation3 + $0x1d8] sm:$0xff] }
  0xb7   :  { %381 = vadd.xlane.f32.xlu1 %v151_v14 }
  0xb8   :  { %351 = vadd.xlane.f32.xlu0 %v136_v15  ;;  %v212_v19 = vpop.xlane.xlu1 %211 }
  0xb9   :  { %v180_v20 = vpop.xlane.xlu0 %179  ;;  %v679_v26 = vrot.slane %v212_v19, %v1576_v18 }
  0xba   :  { %v571_v27 = vrot.slane %v180_v20, %v1576_v18 }
  0xbb   :  { %v680_v28 = vsel %vm572_vm0, %v679_v26, %v675_v24  ;;  %201 = vadd.xlane.f32.xlu1 %v61_v21  ;;  %v153_v24 = vld [vmem:[#allocation3 + $0x340] sm:$0xff] }
  0xbc   :  { %v573_v29 = vsel %vm572_vm0, %v571_v27, %v566_v25  ;;  %411 = vadd.xlane.f32.xlu0 %v166_v22  ;;  %v214_v30 = vpop.xlane.xlu1 %213  ;;  %v138_v25 = vld [vmem:[#allocation3 + $0x2c8] sm:$0xff]  ;;  %v1620_v27 = vsub.s32 %v595_v16, %v1567_v10 }
  0xbd   :  { %v182_v31 = vpop.xlane.xlu0 %181  ;;  %v684_v34 = vrot.slane %v214_v30, %v1579_v23 }
  0xbe   :  { %v578_v35 = vrot.slane %v182_v31, %v1579_v23  ;;  %v63_v31 = vld [vmem:[#allocation3 + $0x70] sm:$0xff] }
  0xbf   :  { %v685_v37 = vsel %vm579_vm1, %v684_v34, %v680_v28  ;;  %263 = vadd.xlane.f32.xlu1 %v92_v32  ;;  %v168_v32 = vld [vmem:[#allocation3 + $0x3b8] sm:$0xff] }
  0xc0   :  { %v580_v38 = vsel %vm579_vm1, %v578_v35, %v573_v29  ;;  %233 = vadd.xlane.f32.xlu0 %v77_v33  ;;  %v244_v39 = vpop.xlane.xlu1 %243 }
  0xc1   :  { %v242_v40 = vpop.xlane.xlu0 %241  ;;  %v758_v43 = vrot.slane %v244_v39, %v1576_v18 }
  0xc2   :  { %v754_v44 = vrot.slane %v242_v40, %v1573_v17  ;;  %v94_v40 = vld [vmem:[#allocation3 + $0x168] sm:$0xff] }
  0xc3   :  { %323 = vadd.xlane.f32.xlu1 %v122_v41  ;;  %v79_v41 = vld [vmem:[#allocation3 + $0xf0] sm:$0xff] }
  0xc4   :  { %v759_v46 = vsel %vm572_vm0, %v758_v43, %v754_v44  ;;  %293 = vadd.xlane.f32.xlu0 %v107_v42  ;;  %v216_v47 = vpop.xlane.xlu1 %215 }
  0xc5   :  { %v184_v48 = vpop.xlane.xlu0 %183  ;;  %v689_v51 = vrot.slane %v216_v47, %v1595_v45 }
  0xc6   :  { %v585_v52 = vrot.slane %v184_v48, %v1595_v45 }
  0xc7   :  { %v690_v54 = vsel %vm586_vm2, %v689_v51, %v685_v37  ;;  %383 = vadd.xlane.f32.xlu1 %v152_v49  ;;  %v124_v49 = vld [vmem:[#allocation3 + $0x258] sm:$0xff] }
  0xc8   :  { %v587_v55 = vsel %vm586_vm2, %v585_v52, %v580_v38  ;;  %353 = vadd.xlane.f32.xlu0 %v137_v50  ;;  %v274_v56 = vpop.xlane.xlu1 %273  ;;  %v109_v50 = vld [vmem:[#allocation3 + $0x1e0] sm:$0xff] }
  0xc9   :  { %v246_v57 = vpop.xlane.xlu0 %245  ;;  %v833_v3 = vrot.slane %v274_v56, %v1573_v17 }
  0xca   :  { %v763_v60 = vrot.slane %v246_v57, %v1579_v23 }
  0xcb   :  { %203 = vadd.xlane.f32.xlu1 %v62_v58  ;;  %v154_v58 = vld [vmem:[#allocation3 + $0x348] sm:$0xff] }
  0xcc   :  { %v764_v62 = vsel %vm579_vm1, %v763_v60, %v759_v46  ;;  %413 = vadd.xlane.f32.xlu0 %v167_v59  ;;  %v186_v63 = vpop.xlane.xlu1 %185  ;;  %v139_v59 = vld [vmem:[#allocation3 + $0x2d0] sm:$0xff] }
  0xcd   :  { %v276_v0 = vpop.xlane.xlu0 %275  ;;  %v592_v4 = vrot.slane %v186_v63, %v1605_v61  ;;  %v1640_v63 = vsub.s32 %v602_v53, %v1567_v10 }
  0xce   :  { %v837_v5 = vrot.slane %v276_v0, %v1576_v18 }
  0xcf   :  { %v594_v6 = vsel %vm593_vm3, %v592_v4, %v587_v55  ;;  %265 = vadd.xlane.f32.xlu1 %v93_v1  ;;  %v169_v4 = vld [vmem:[#allocation3 + $0x3c0] sm:$0xff] }
  0xd0   :  { %v838_v8 = vsel %vm572_vm0, %v837_v5, %v833_v3  ;;  %235 = vadd.xlane.f32.xlu0 %v78_v2  ;;  %v248_v9 = vpop.xlane.xlu1 %247  ;;  %v64_v3 = vld [vmem:[#allocation3 + $0x78] sm:$0xff] }
  0xd1   :  { %v218_v11 = vpop.xlane.xlu0 %217  ;;  %v768_v14 = vrot.slane %v248_v9, %v1595_v45 }
  0xd2   :  { %v694_v15 = vrot.slane %v218_v11, %v1605_v61 }
  0xd3   :  { %v769_v19 = vsel %vm586_vm2, %v768_v14, %v764_v62  ;;  %325 = vadd.xlane.f32.xlu1 %v123_v12  ;;  %v80_v14 = vld [vmem:[#allocation3 + $0xf8] sm:$0xff] }
  0xd4   :  { %v695_v20 = vsel %vm593_vm3, %v694_v15, %v690_v54  ;;  %295 = vadd.xlane.f32.xlu0 %v108_v13  ;;  %v306_v21 = vpop.xlane.xlu1 %305  ;;  %v95_v13 = vld [vmem:[#allocation3 + $0x170] sm:$0xff] }
  0xd5   :  { %v278_v22 = vpop.xlane.xlu0 %277  ;;  %v912_v33 = vrot.slane %v306_v21, %v1573_v17 }
  0xd6   :  { %v842_v26 = vrot.slane %v278_v22, %v1579_v23 }
  0xd7   :  { %385 = vadd.xlane.f32.xlu1 %v153_v24  ;;  %v125_v24 = vld [vmem:[#allocation3 + $0x260] sm:$0xff] }
  0xd8   :  { %v843_v28 = vsel %vm579_vm1, %v842_v26, %v838_v8  ;;  %355 = vadd.xlane.f32.xlu0 %v138_v25  ;;  %v188_v29 = vpop.xlane.xlu1 %187  ;;  %v110_v25 = vld [vmem:[#allocation3 + $0x1e8] sm:$0xff] }
  0xd9   :  { %v308_v30 = vpop.xlane.xlu0 %307  ;;  %v599_v34 = vrot.slane %v188_v29, %v1620_v27  ;;  %v609_v29 = vadd.s32 4294967240, %v1565_v7 }
  0xda   :  { %v916_v35 = vrot.slane %v308_v30, %v1576_v18 }
  0xdb   :  { %v601_v36 = vsel %vm600_vm4, %v599_v34, %v594_v6  ;;  %205 = vadd.xlane.f32.xlu1 %v63_v31  ;;  %v155_v34 = vld [vmem:[#allocation3 + $0x350] sm:$0xff] }
  0xdc   :  { %v917_v37 = vsel %vm572_vm0, %v916_v35, %v912_v33  ;;  %415 = vadd.xlane.f32.xlu0 %v168_v32  ;;  %v250_v38 = vpop.xlane.xlu1 %249  ;;  %v140_v35 = vld [vmem:[#allocation3 + $0x2d8] sm:$0xff] }
  0xdd   :  { %v220_v39 = vpop.xlane.xlu0 %219  ;;  %v773_v42 = vrot.slane %v250_v38, %v1605_v61  ;;  %v1659_v38 = vsub.s32 %v609_v29, %v1567_v10  ;;  %v157_v29 = vld [vmem:[#allocation3 + $0x360] sm:$0xff] }
  0xde   :  { %v699_v43 = vrot.slane %v220_v39, %v1620_v27 }
  0xdf   :  { %v774_v44 = vsel %vm593_vm3, %v773_v42, %v769_v19  ;;  %267 = vadd.xlane.f32.xlu1 %v94_v40  ;;  %v96_v42 = vld [vmem:[#allocation3 + $0x178] sm:$0xff] }
  0xe0   :  { %v700_v46 = vsel %vm600_vm4, %v699_v43, %v695_v20  ;;  %237 = vadd.xlane.f32.xlu0 %v79_v41  ;;  %v310_v47 = vpop.xlane.xlu1 %309  ;;  %v170_v43 = vld [vmem:[#allocation3 + $0x3c8] sm:$0xff] }
  0xe1   :  { %v280_v48 = vpop.xlane.xlu0 %279  ;;  %v921_v51 = vrot.slane %v310_v47, %v1579_v23 }
  0xe2   :  { %v847_v52 = vrot.slane %v280_v48, %v1595_v45 }
  0xe3   :  { %v922_v54 = vsel %vm579_vm1, %v921_v51, %v917_v37  ;;  %327 = vadd.xlane.f32.xlu1 %v124_v49  ;;  %v126_v51 = vld [vmem:[#allocation3 + $0x268] sm:$0xff] }
  0xe4   :  { %v848_v55 = vsel %vm586_vm2, %v847_v52, %v843_v28  ;;  %297 = vadd.xlane.f32.xlu0 %v109_v50  ;;  %v340_v56 = vpop.xlane.xlu1 %339  ;;  %v111_v52 = vld [vmem:[#allocation3 + $0x1f0] sm:$0xff] }
  0xe5   :  { %v338_v57 = vpop.xlane.xlu0 %337  ;;  %v995_v60 = vrot.slane %v340_v56, %v1576_v18 }
  0xe6   :  { %v991_v62 = vrot.slane %v338_v57, %v1573_v17 }
  0xe7   :  { %387 = vadd.xlane.f32.xlu1 %v154_v58 }
  0xe8   :  { %v996_v0 = vsel %vm572_vm0, %v995_v60, %v991_v62  ;;  %357 = vadd.xlane.f32.xlu0 %v139_v59  ;;  %v222_v1 = vpop.xlane.xlu1 %221  ;;  %v156_v59 = vld [vmem:[#allocation3 + $0x358] sm:$0xff]  ;;  %v141_v60 = vld [vmem:[#allocation3 + $0x2e0] sm:$0xff] }
  0xe9   :  { %v190_v2 = vpop.xlane.xlu0 %189  ;;  %v704_v5 = vrot.slane %v222_v1, %v1640_v63  ;;  %v616_v1 = vadd.s32 4294967232, %v1565_v7 }
  0xea   :  { %v606_v6 = vrot.slane %v190_v2, %v1640_v63 }
  0xeb   :  { %v705_v8 = vsel %vm607_vm5, %v704_v5, %v700_v46  ;;  %207 = vadd.xlane.f32.xlu1 %v64_v3 }
  0xec   :  { %v608_v9 = vsel %vm607_vm5, %v606_v6, %v601_v36  ;;  %417 = vadd.xlane.f32.xlu0 %v169_v4  ;;  %v282_v11 = vpop.xlane.xlu1 %281  ;;  %v112_v6 = vld [vmem:[#allocation3 + $0x1f8] sm:$0xff] }
  0xed   :  { %v252_v12 = vpop.xlane.xlu0 %251  ;;  %v852_v15 = vrot.slane %v282_v11, %v1605_v61  ;;  %v1677_v11 = vsub.s32 %v616_v1, %v1567_v10 }
  0xee   :  { %v778_v16 = vrot.slane %v252_v12, %v1620_v27 }
  0xef   :  { %v853_v19 = vsel %vm593_vm3, %v852_v15, %v848_v55  ;;  %269 = vadd.xlane.f32.xlu1 %v95_v13  ;;  %v142_v15 = vld [vmem:[#allocation3 + $0x2e8] sm:$0xff] }
  0xf0   :  { %v779_v20 = vsel %vm600_vm4, %v778_v16, %v774_v44  ;;  %239 = vadd.xlane.f32.xlu0 %v80_v14  ;;  %v342_v21 = vpop.xlane.xlu1 %341  ;;  %v127_v16 = vld [vmem:[#allocation3 + $0x270] sm:$0xff] }
  0xf1   :  { %v312_v22 = vpop.xlane.xlu0 %311  ;;  %v1000_v26 = vrot.slane %v342_v21, %v1579_v23 }
  0xf2   :  { %v926_v28 = vrot.slane %v312_v22, %v1595_v45 }
  0xf3   :  { %v1001_v30 = vsel %vm579_vm1, %v1000_v26, %v996_v0  ;;  %329 = vadd.xlane.f32.xlu1 %v125_v24 }
  0xf4   :  { %v927_v31 = vsel %vm586_vm2, %v926_v28, %v922_v54  ;;  %299 = vadd.xlane.f32.xlu0 %v110_v25  ;;  %v372_v32 = vpop.xlane.xlu1 %371  ;;  %v172_v28 = vld [vmem:[#allocation3 + $0x3d8] sm:$0xff] }
  0xf5   :  { %v370_v33 = vpop.xlane.xlu0 %369  ;;  %v1074_v36 = vrot.slane %v372_v32, %v1576_v18 }
  0xf6   :  { %v1070_v37 = vrot.slane %v370_v33, %v1573_v17 }
  0xf7   :  { %389 = vadd.xlane.f32.xlu1 %v155_v34  ;;  %v143_v34 = vld [vmem:[#allocation3 + $0x2f0] sm:$0xff] }
  0xf8   :  { %v1075_v39 = vsel %vm572_vm0, %v1074_v36, %v1070_v37  ;;  %359 = vadd.xlane.f32.xlu0 %v140_v35  ;;  %v224_v40 = vpop.xlane.xlu1 %223  ;;  %v128_v35 = vld [vmem:[#allocation3 + $0x278] sm:$0xff]  ;;  %v623_v36 = vadd.s32 4294967224, %v1565_v7 }
  0xf9   :  { %v192_v41 = vpop.xlane.xlu0 %191  ;;  %v709_v44 = vrot.slane %v224_v40, %v1659_v38 }
  0xfa   :  { %v613_v46 = vrot.slane %v192_v41, %v1659_v38 }
  0xfb   :  { %v710_v47 = vsel %vm614_vm6, %v709_v44, %v705_v8  ;;  %271 = vadd.xlane.f32.xlu1 %v96_v42  ;;  %v171_v8 = vld [vmem:[#allocation3 + $0x3d0] sm:$0xff]  ;;  %v173_v42 = vld [vmem:[#allocation3 + $0x3e0] sm:$0xff] }
  0xfc   :  { %v615_v48 = vsel %vm614_vm6, %v613_v46, %v608_v9  ;;  %419 = vadd.xlane.f32.xlu0 %v170_v43  ;;  %v284_v49 = vpop.xlane.xlu1 %283  ;;  %v158_v46 = vld [vmem:[#allocation3 + $0x368] sm:$0xff] }
  0xfd   :  { %v254_v50 = vpop.xlane.xlu0 %253  ;;  %v857_v53 = vrot.slane %v284_v49, %v1620_v27  ;;  %v1247_v49 = vld [vmem:[#allocation6 + $0x8] sm:$0xff] }
  0xfe   :  { %v783_v54 = vrot.slane %v254_v50, %v1640_v63 }
  0xff   :  { %v858_v55 = vsel %vm600_vm4, %v857_v53, %v853_v19  ;;  %331 = vadd.xlane.f32.xlu1 %v126_v51  ;;  %v1517_v53 = vmov 0.0|0.0  }
 0x100   :  { %v784_v56 = vsel %vm607_vm5, %v783_v54, %v779_v20  ;;  %301 = vadd.xlane.f32.xlu0 %v111_v52  ;;  %v344_v57 = vpop.xlane.xlu1 %343  ;;  %1409 = vmatprep.subr.bf16.mxu0 %v1517_v53 }
 0x101   :  { %v314_v58 = vpop.xlane.xlu0 %313  ;;  %v1005_v62 = vrot.slane %v344_v57, %v1595_v45 }
 0x102   :  { %v931_v0 = vrot.slane %v314_v58, %v1605_v61 }
 0x103   :  { %v1006_v2 = vsel %vm586_vm2, %v1005_v62, %v1001_v30  ;;  %391 = vadd.xlane.f32.xlu1 %v156_v59  ;;  %v144_v59 = vld [vmem:[#allocation3 + $0x2f8] sm:$0xff] }
 0x104   :  { %v932_v3 = vsel %vm593_vm3, %v931_v0, %v927_v31  ;;  %361 = vadd.xlane.f32.xlu0 %v141_v60  ;;  %v402_v4 = vpop.xlane.xlu1 %401  ;;  %v1248_v60 = vld [vmem:[#allocation6 + $0x10] sm:$0xff]  ;;  %v1249_v62 = vld [vmem:[#allocation6 + $0x18] sm:$0xff] }
 0x105   :  { %v374_v5 = vpop.xlane.xlu0 %373  ;;  %v1149_v19 = vrot.slane %v402_v4, %v1573_v17 }
 0x106   :  { %v1079_v9 = vrot.slane %v374_v5, %v1579_v23  ;;  %v160_v5 = vld [vmem:[#allocation3 + $0x378] sm:$0xff] }
 0x107   :  { %303 = vadd.xlane.f32.xlu1 %v112_v6 }
 0x108   :  { %v1080_v12 = vsel %vm579_vm1, %v1079_v9, %v1075_v39  ;;  %421 = vadd.xlane.f32.xlu0 %v171_v8  ;;  %v194_v13 = vpop.xlane.xlu1 %193  ;;  %v174_v9 = vld [vmem:[#allocation3 + $0x3e8] sm:$0xff] }
 0x109   :  { %v404_v14 = vpop.xlane.xlu0 %403  ;;  %v620_v20 = vrot.slane %v194_v13, %v1677_v11  ;;  %v1251_v13 = vld [vmem:[#allocation6 + $0x28] sm:$0xff] }
 0x10a   :  { %v1153_v21 = vrot.slane %v404_v14, %v1576_v18 }
 0x10b   :  { %v622_v22 = vsel %vm621_vm7, %v620_v20, %v615_v48  ;;  %363 = vadd.xlane.f32.xlu1 %v142_v15  ;;  %v1246_v48 = vld [vmem:[#allocation6] sm:$0xff]  ;;  %v175_v20 = vld [vmem:[#allocation3 + $0x3f0] sm:$0xff] }
 0x10c   :  { %v1154_v24 = vsel %vm572_vm0, %v1153_v21, %v1149_v19  ;;  %333 = vadd.xlane.f32.xlu0 %v127_v16  ;;  %v256_v25 = vpop.xlane.xlu1 %255  ;;  %v1410_v52 = vpack.c.bf16 %v1247_v49, %v1246_v48  ;;  %v1257_v48 = vld [vmem:[#allocation6 + $0x58] sm:$0xff]  ;;  %vm1225_vm0 = vcmask 1041409  }
 0x10d   :  { %v226_v26 = vpop.xlane.xlu0 %225  ;;  %v788_v30 = vrot.slane %v256_v25, %v1659_v38  ;;  %v1252_v25 = vld [vmem:[#allocation6 + $0x30] sm:$0xff] }
 0x10e   :  { %v714_v31 = vrot.slane %v226_v26, %v1677_v11  ;;  %1411 = vmatpush3.bf16.msra.mxu0 %v1410_v52  ;;  %v1253_v26 = vld [vmem:[#allocation6 + $0x38] sm:$0xff] }
 0x10f   :  { %v789_v17 = vsel %vm614_vm6, %v788_v30, %v784_v56  ;;  %423 = vadd.xlane.f32.xlu1 %v172_v28  ;;  %v159_v56 = vld [vmem:[#allocation3 + $0x370] sm:$0xff]  ;;  %1412 = vmatprep.subr.bf16.mxu0 %v1517_v53  ;;  %v630_v30 = vadd.s32 4294967216, %v1565_v7 }
 0x110   :  { %v715_v32 = vsel %vm621_vm7, %v714_v31, %v710_v47  ;;  %393 = vadd.xlane.f32.xlu0 %v157_v29  ;;  %v316_v18 = vpop.xlane.xlu1 %315  ;;  %v1699_v47 = vsub.s32 %v623_v36, %v1567_v10  ;;  %v1419_v31 = vpack.c.bf16 %v1253_v26, %v1252_v25 }
 0x111   :  { %v286_v33 = vpop.xlane.xlu0 %285  ;;  %v936_v37 = vrot.slane %v316_v18, %v1620_v27 }
 0x112   :  { %v862_v39 = vrot.slane %v286_v33, %v1640_v63 }
 0x113   :  { %v1693_v40 = vsel %vm600_vm4, %v936_v37, %v932_v3  ;;  %365 = vadd.xlane.f32.xlu1 %v143_v34  ;;  %v1413_v3 = vpack.c.bf16 %v1249_v62, %v1248_v60  ;;  %v1254_v34 = vld [vmem:[#allocation6 + $0x40] sm:$0xff] }
 0x114   :  { %v1696_v41 = vsel %vm607_vm5, %v862_v39, %v858_v55  ;;  %335 = vadd.xlane.f32.xlu0 %v128_v35  ;;  %v376_v43 = vpop.xlane.xlu1 %375  ;;  %v1255_v35 = vld [vmem:[#allocation6 + $0x48] sm:$0xff]  ;;  %v1727_v39 = vsub.s32 %v630_v30, %v1567_v10 }
 0x115   :  { %v346_v44 = vpop.xlane.xlu0 %345  ;;  %v1084_v50 = vrot.slane %v376_v43, %v1595_v45  ;;  %1414 = vmatpush3.bf16.msra.mxu0 %v1413_v3 }
 0x116   :  { %v1010_v51 = vrot.slane %v346_v44, %v1605_v61  ;;  %1415 = vmatprep.subr.bf16.mxu0 %v1517_v53 }
 0x117   :  { %v1085_v54 = vsel %vm586_vm2, %v1084_v50, %v1080_v12  ;;  %425 = vadd.xlane.f32.xlu1 %v173_v42  ;;  %v1250_v12 = vld [vmem:[#allocation6 + $0x20] sm:$0xff] }
 0x118   :  { %v1011_v55 = vsel %vm593_vm3, %v1010_v51, %v1006_v2  ;;  %395 = vadd.xlane.f32.xlu0 %v158_v46  ;;  %v196_v57 = vpop.xlane.xlu1 %195  ;;  %v1416_v15 = vpack.c.bf16 %v1251_v13, %v1250_v12  ;;  %v1256_v46 = vld [vmem:[#allocation6 + $0x50] sm:$0xff] }
 0x119   :  { %v406_v58 = vpop.xlane.xlu0 %405  ;;  %v627_v0 = vrot.slane %v196_v57, %v1699_v47  ;;  %v1425_v51 = vpack.c.bf16 %v1257_v48, %v1256_v46 }
 0x11a   :  { %v1158_v1 = vrot.slane %v406_v58, %v1579_v23  ;;  %1417 = vmatpush3.bf16.msra.mxu0 %v1416_v15  ;;  %v1259_v58 = vld [vmem:[#allocation6 + $0x68] sm:$0xff]  ;;  %v1519_v15 = vmov 0.0  }
 0x11b   :  { %v629_v4 = vsel %vm628_vm8, %v627_v0, %v622_v22  ;;  %397 = vadd.xlane.f32.xlu1 %v159_v56  ;;  %1418 = vmatprep.subr.bf16.mxu0 %v1517_v53 }
 0x11c   :  { %v1159_v2 = vsel %vm579_vm1, %v1158_v1, %v1154_v24  ;;  %367 = vadd.xlane.f32.xlu0 %v144_v59  ;;  %v258_v6 = vpop.xlane.xlu1 %257  ;;  %v176_v24 = vld [vmem:[#allocation3 + $0x3f8] sm:$0xff]  ;;  %1406 = vmatprep.mubr.msk.f32.mxu0 %vm1518_vm10, %v1519_v15  ;;  %vm1227_vm1 = vcmask 1042434  }
 0x11d   :  { %v228_v8 = vpop.xlane.xlu0 %227  ;;  %v793_v14 = vrot.slane %v258_v6, %v1677_v11 }
 0x11e   :  { %v719_v23 = vrot.slane %v228_v8, %v1699_v47  ;;  %1420 = vmatpush3.bf16.msra.mxu0 %v1419_v31  ;;  %v637_v8 = vadd.s32 4294967208, %v1565_v7 }
 0x11f   :  { %v794_v16 = vsel %vm621_vm7, %v793_v14, %v789_v17  ;;  %399 = vadd.xlane.f32.xlu1 %v160_v5  ;;  %1421 = vmatprep.subr.bf16.mxu0 %v1517_v53 }
 0x120   :  { %v720_v19 = vsel %vm628_vm8, %v719_v23, %v715_v32  ;;  %427 = vadd.xlane.f32.xlu0 %v174_v9  ;;  %v318_v21 = vpop.xlane.xlu1 %317 }
 0x121   :  { %v288_v22 = vpop.xlane.xlu0 %287  ;;  %v941_v28 = vrot.slane %v318_v21, %v1640_v63 }
 0x122   :  { %v867_v29 = vrot.slane %v288_v22, %v1659_v38 }
 0x123   :  { %v942_v17 = vsel %vm607_vm5, %v941_v28, %v1693_v40  ;;  %431 = vadd.xlane.f32.xlu1 %v176_v24  ;;  %v1422_v40 = vpack.c.bf16 %v1255_v35, %v1254_v34 }
 0x124   :  { %v868_v32 = vsel %vm614_vm6, %v867_v29, %v1696_v41  ;;  %429 = vadd.xlane.f32.xlu0 %v175_v20  ;;  %v378_v18 = vpop.xlane.xlu1 %377  ;;  %v1751_v20 = vsub.s32 %v637_v8, %v1567_v10 }
 0x125   :  { %v348_v33 = vpop.xlane.xlu0 %347  ;;  %v1089_v36 = vrot.slane %v378_v18, %v1605_v61  ;;  %1423 = vmatpush3.bf16.msra.mxu0 %v1422_v40 }
 0x126   :  { %v1015_v37 = vrot.slane %v348_v33, %v1620_v27  ;;  %1424 = vmatprep.subr.bf16.mxu0 %v1517_v53 }
 0x127   :  { %v1090_v42 = vsel %vm593_vm3, %v1089_v36, %v1085_v54 }
 0x128   :  { %v1016_v41 = vsel %vm600_vm4, %v1015_v37, %v1011_v55  ;;  %v198_v43 = vpop.xlane.xlu1 %197  ;;  %v1258_v55 = vld [vmem:[#allocation6 + $0x60] sm:$0xff]  ;;  %v644_v37 = vadd.s32 4294967200, %v1565_v7 }
 0x129   :  { %v408_v44 = vpop.xlane.xlu0 %407  ;;  %v634_v49 = vrot.slane %v198_v43, %v1727_v39  ;;  %1426 = vmatpush3.bf16.msra.mxu0 %v1425_v51  ;;  %v1428_v62 = vpack.c.bf16 %v1259_v58, %v1258_v55 }
 0x12a   :  { %v1163_v50 = vrot.slane %v408_v44, %v1595_v45  ;;  %1427 = vmatprep.subr.bf16.mxu0 %v1517_v53  ;;  %v1771_v48 = vsub.s32 %v644_v37, %v1567_v10 }
 0x12b   :  { %v636_v52 = vsel %vm635_vm9, %v634_v49, %v629_v4  ;;  %v1260_v4 = vld [vmem:[#allocation6 + $0x70] sm:$0xff] }
 0x12c   :  { %v1164_v56 = vsel %vm586_vm2, %v1163_v50, %v1159_v2  ;;  %v260_v54 = vpop.xlane.xlu1 %259  ;;  %v1261_v2 = vld [vmem:[#allocation6 + $0x78] sm:$0xff]  ;;  %vm1229_vm2 = vcmask 1043459  }
 0x12d   :  { %v230_v57 = vpop.xlane.xlu0 %229  ;;  %v798_v59 = vrot.slane %v260_v54, %v1699_v47  ;;  %1429 = vmatpush3.bf16.msra.mxu0 %v1428_v62  ;;  %v1431_v9 = vpack.c.bf16 %v1261_v2, %v1260_v4  ;;  %v651_v2 = vadd.s32 4294967192, %v1565_v7 }
 0x12e   :  { %v724_v60 = vrot.slane %v230_v57, %v1727_v39  ;;  %1430 = vmatprep.subr.bf16.mxu0 %v1517_v53 }
 0x12f   :  { %v799_v45 = vsel %vm628_vm8, %v798_v59, %v794_v16 }
 0x130   :  { %v725_v0 = vsel %vm635_vm9, %v724_v60, %v720_v19  ;;  %v320_v1 = vpop.xlane.xlu1 %319 }
 0x131   :  { %v290_v3 = vpop.xlane.xlu0 %289  ;;  %v946_v5 = vrot.slane %v320_v1, %v1659_v38  ;;  %1432 = vmatpush3.bf16.msra.mxu0 %v1431_v9 }
 0x132   :  { %v872_v6 = vrot.slane %v290_v3, %v1677_v11 }
 0x133   :  { %v947_v12 = vsel %vm614_vm6, %v946_v5, %v942_v17 }
 0x134   :  { %v873_v13 = vsel %vm621_vm7, %v872_v6, %v868_v32  ;;  %v380_v14 = vpop.xlane.xlu1 %379 }
 0x135   :  { %v350_v23 = vpop.xlane.xlu0 %349  ;;  %v1094_v16 = vrot.slane %v380_v14, %v1620_v27  ;;  %v1791_v14 = vsub.s32 %v651_v2, %v1567_v10 }
 0x136   :  { %v1020_v19 = vrot.slane %v350_v23, %v1640_v63 }
 0x137   :  { %v1095_v53 = vsel %vm600_vm4, %v1094_v16, %v1090_v42 }
 0x138   :  { %v1021_v21 = vsel %vm607_vm5, %v1020_v19, %v1016_v41  ;;  %v200_v22 = vpop.xlane.xlu1 %199 }
 0x139   :  { %v410_v24 = vpop.xlane.xlu0 %409  ;;  %v641_v25 = vrot.slane %v200_v22, %v1751_v20 }
 0x13a   :  { %v1168_v26 = vrot.slane %v410_v24, %v1605_v61 }
 0x13b   :  { %v643_v28 = vsel %vm642_vm11, %v641_v25, %v636_v52 }
 0x13c   :  { %v1169_v29 = vsel %vm593_vm3, %v1168_v26, %v1164_v56  ;;  %v262_v30 = vpop.xlane.xlu1 %261  ;;  %vm1231_vm3 = vcmask 1044484  }
 0x13d   :  { %v232_v31 = vpop.xlane.xlu0 %231  ;;  %v803_v17 = vrot.slane %v262_v30, %v1727_v39 }
 0x13e   :  { %v729_v32 = vrot.slane %v232_v31, %v1751_v20 }
 0x13f   :  { %v804_v18 = vsel %vm635_vm9, %v803_v17, %v799_v45 }
 0x140   :  { %v730_v33 = vsel %vm642_vm11, %v729_v32, %v725_v0  ;;  %v322_v34 = vpop.xlane.xlu1 %321 }
 0x141   :  { %v292_v35 = vpop.xlane.xlu0 %291  ;;  %v951_v36 = vrot.slane %v322_v34, %v1677_v11 }
 0x142   :  { %v877_v61 = vrot.slane %v292_v35, %v1699_v47 }
 0x143   :  { %v952_v40 = vsel %vm621_vm7, %v951_v36, %v947_v12 }
 0x144   :  { %v878_v42 = vsel %vm628_vm8, %v877_v61, %v873_v13  ;;  %v382_v41 = vpop.xlane.xlu1 %381 }
 0x145   :  { %v352_v43 = vpop.xlane.xlu0 %351  ;;  %v1099_v44 = vrot.slane %v382_v41, %v1640_v63 }
 0x146   :  { %v1025_v46 = vrot.slane %v352_v43, %v1659_v38 }
 0x147   :  { %v1100_v49 = vsel %vm607_vm5, %v1099_v44, %v1095_v53 }
 0x148   :  { %v1026_v50 = vsel %vm614_vm6, %v1025_v46, %v1021_v21  ;;  %v202_v51 = vpop.xlane.xlu1 %201 }
 0x149   :  { %v412_v52 = vpop.xlane.xlu0 %411  ;;  %v648_v56 = vrot.slane %v202_v51, %v1771_v48 }
 0x14a   :  { %v1173_v54 = vrot.slane %v412_v52, %v1620_v27 }
 0x14b   :  { %v650_v57 = vsel %vm649_vm12, %v648_v56, %v643_v28 }
 0x14c   :  { %v1174_v55 = vsel %vm600_vm4, %v1173_v54, %v1169_v29  ;;  %v264_v58 = vpop.xlane.xlu1 %263  ;;  %vm1233_vm4 = vcmask 1045509  }
 0x14d   :  { %v234_v59 = vpop.xlane.xlu0 %233  ;;  %v808_v60 = vrot.slane %v264_v58, %v1751_v20  ;;  %v665_v58 = vadd.s32 4294967176, %v1565_v7 }
 0x14e   :  { %v734_v62 = vrot.slane %v234_v59, %v1771_v48 }
 0x14f   :  { %v809_v45 = vsel %vm642_vm11, %v808_v60, %v804_v18 }
 0x150   :  { %v735_v0 = vsel %vm649_vm12, %v734_v62, %v730_v33  ;;  %v324_v1 = vpop.xlane.xlu1 %323  ;;  %v658_v33 = vadd.s32 4294967184, %v1565_v7  ;;  %v1833_v62 = vsub.s32 %v665_v58, %v1567_v10 }
 0x151   :  { %v294_v3 = vpop.xlane.xlu0 %293  ;;  %v956_v4 = vrot.slane %v324_v1, %v1699_v47 }
 0x152   :  { %v882_v27 = vrot.slane %v294_v3, %v1727_v39 }
 0x153   :  { %v957_v5 = vsel %vm628_vm8, %v956_v4, %v952_v40 }
 0x154   :  { %v883_v6 = vsel %vm635_vm9, %v882_v27, %v878_v42  ;;  %v384_v8 = vpop.xlane.xlu1 %383  ;;  %v1813_v42 = vsub.s32 %v658_v33, %v1567_v10 }
 0x155   :  { %v354_v9 = vpop.xlane.xlu0 %353  ;;  %v1104_v12 = vrot.slane %v384_v8, %v1659_v38 }
 0x156   :  { %v1030_v13 = vrot.slane %v354_v9, %v1677_v11 }
 0x157   :  { %v1105_v23 = vsel %vm614_vm6, %v1104_v12, %v1100_v49 }
 0x158   :  { %v1031_v15 = vsel %vm621_vm7, %v1030_v13, %v1026_v50  ;;  %v204_v16 = vpop.xlane.xlu1 %203 }
 0x159   :  { %v414_v19 = vpop.xlane.xlu0 %413  ;;  %v655_v53 = vrot.slane %v204_v16, %v1791_v14 }
 0x15a   :  { %v1178_v21 = vrot.slane %v414_v19, %v1640_v63 }
 0x15b   :  { %v657_v22 = vsel %vm656_vm13, %v655_v53, %v650_v57 }
 0x15c   :  { %v1179_v24 = vsel %vm607_vm5, %v1178_v21, %v1174_v55  ;;  %v266_v25 = vpop.xlane.xlu1 %265  ;;  %vm1235_vm5 = vcmask 1046534  }
 0x15d   :  { %v236_v26 = vpop.xlane.xlu0 %235  ;;  %v813_v28 = vrot.slane %v266_v25, %v1771_v48 }
 0x15e   :  { %v739_v29 = vrot.slane %v236_v26, %v1791_v14 }
 0x15f   :  { %v814_v30 = vsel %vm649_vm12, %v813_v28, %v809_v45 }
 0x160   :  { %v740_v31 = vsel %vm656_vm13, %v739_v29, %v735_v0  ;;  %v326_v17 = vpop.xlane.xlu1 %325 }
 0x161   :  { %v296_v32 = vpop.xlane.xlu0 %295  ;;  %v961_v18 = vrot.slane %v326_v17, %v1727_v39 }
 0x162   :  { %v887_v63 = vrot.slane %v296_v32, %v1751_v20 }
 0x163   :  { %v1807_v34 = vsel %vm635_vm9, %v961_v18, %v957_v5 }
 0x164   :  { %v888_v35 = vsel %vm642_vm11, %v887_v63, %v883_v6  ;;  %v386_v36 = vpop.xlane.xlu1 %385 }
 0x165   :  { %v356_v61 = vpop.xlane.xlu0 %355  ;;  %v1109_v37 = vrot.slane %v386_v36, %v1677_v11 }
 0x166   :  { %v1035_v40 = vrot.slane %v356_v61, %v1699_v47 }
 0x167   :  { %v1816_v41 = vsel %vm621_vm7, %v1109_v37, %v1105_v23 }
 0x168   :  { %v1819_v43 = vsel %vm628_vm8, %v1035_v40, %v1031_v15  ;;  %v206_v44 = vpop.xlane.xlu1 %205 }
 0x169   :  { %v416_v46 = vpop.xlane.xlu0 %415  ;;  %v662_v49 = vrot.slane %v206_v44, %v1813_v42 }
 0x16a   :  { %v1183_v50 = vrot.slane %v416_v46, %v1659_v38 }
 0x16b   :  { %v664_v51 = vsel %vm663_vm14, %v662_v49, %v657_v22 }
 0x16c   :  { %v1825_v52 = vsel %vm614_vm6, %v1183_v50, %v1179_v24  ;;  %v268_v56 = vpop.xlane.xlu1 %267  ;;  %vm1237_vm6 = vcmask 1047559  }
 0x16d   :  { %v238_v54 = vpop.xlane.xlu0 %237  ;;  %v818_v13 = vrot.slane %v268_v56, %v1791_v14 }
 0x16e   :  { %v744_v0 = vrot.slane %v238_v54, %v1813_v42 }
 0x16f   :  { %v819_v19 = vsel %vm656_vm13, %v818_v13, %v814_v30 }
 0x170   :  { %v328_v57 = vpop.xlane.xlu1 %327  ;;  %v745_v27 = vsel %vm663_vm14, %v744_v0, %v740_v31 }
 0x171   :  { %v298_v55 = vpop.xlane.xlu0 %297  ;;  %v966_v49 = vrot.slane %v328_v57, %v1751_v20 }
 0x172   :  { %v892_v28 = vrot.slane %v298_v55, %v1771_v48 }
 0x173   :  { %v967_v55 = vsel %vm642_vm11, %v966_v49, %v1807_v34 }
 0x174   :  { %v1828_v59 = vpop.xlane.xlu1 %387  ;;  %v893_v30 = vsel %vm649_vm12, %v892_v28, %v888_v35 }
 0x175   :  { %v1830_v60 = vpop.xlane.xlu0 %357  ;;  %v1114_v34 = vrot.slane %v1828_v59, %v1699_v47 }
 0x177   :  { %v1115_v59 = vsel %vm628_vm8, %v1114_v34, %v1816_v41 }
 0x178   :  { %v208_v45 = vpop.xlane.xlu1 %207 }
 0x179   :  { %v1835_v38 = vpop.xlane.xlu0 %417  ;;  %v669_v1 = vrot.slane %v208_v45, %v1833_v62 }
 0x17b   :  { %v671_v2 = vsel %vm670_vm15, %v669_v1, %v664_v51 }
 0x17c   :  { %v270_v3 = vpop.xlane.xlu1 %269 }
 0x17d   :  { %v240_v4 = vpop.xlane.xlu0 %239  ;;  %v823_v23 = vrot.slane %v270_v3, %v1813_v42  ;;  %v1040_v3 = vrot.slane %v1830_v60, %v1727_v39 }
 0x17e   :  { %v749_v7 = vrot.slane %v240_v4, %v1833_v62 }
 0x17f   :  { %v824_v21 = vsel %vm663_vm14, %v823_v23, %v819_v19  ;;  %v1041_v13 = vsel %vm635_vm9, %v1040_v3, %v1819_v43  ;;  %v1188_v43 = vrot.slane %v1835_v38, %v1677_v11 }
 0x180   :  { %v750_v10 = vsel %vm670_vm15, %v749_v7, %v745_v27  ;;  %v330_v6 = vpop.xlane.xlu1 %329 }
 0x181   :  { %v1226_v5 = vsel %vm1225_vm0, %v750_v10, %v671_v2  ;;  %v300_v8 = vpop.xlane.xlu0 %299  ;;  %v971_v50 = vrot.slane %v330_v6, %v1771_v48 }
 0x182   :  { %v897_v17 = vrot.slane %v300_v8, %v1791_v14 }
 0x183   :  { %v972_v58 = vsel %vm649_vm12, %v971_v50, %v967_v55  ;;  %v1356_v55 = vld [vmem:[%s1943_s2] ss:$0 sm:$0xff] }
 0x184   :  { %v1843_v9 = vpop.xlane.xlu1 %389  ;;  %v898_v33 = vsel %vm656_vm13, %v897_v17, %v893_v30 }
 0x185   :  { %v360_v12 = vpop.xlane.xlu0 %359  ;;  %v1119_v60 = vrot.slane %v1843_v9, %v1727_v39 }
 0x186   :  { %v1045_v7 = vrot.slane %v360_v12, %v1751_v20 }
 0x188   :  { %v272_v15 = vpop.xlane.xlu1 %271  ;;  %v1046_v23 = vsel %vm642_vm11, %v1045_v7, %v1041_v13 }
 0x189   :  { %v1847_v16 = vpop.xlane.xlu0 %419  ;;  %v828_v53 = vrot.slane %v272_v15, %v1833_v62 }
 0x18a   :  { %v1193_v41 = vrot.slane %v1847_v16, %v1699_v47  ;;  %v1189_v47 = vsel %vm621_vm7, %v1188_v43, %v1825_v52 }
 0x18b   :  { %v829_v22 = vsel %vm670_vm15, %v828_v53, %v824_v21 }
 0x18c   :  { %v1228_v24 = vsel %vm1227_vm1, %v829_v22, %v1226_v5  ;;  %v332_v25 = vpop.xlane.xlu1 %331 }
 0x18d   :  { %v302_v26 = vpop.xlane.xlu0 %301  ;;  %v976_v56 = vrot.slane %v332_v25, %v1791_v14 }
 0x18e   :  { %v902_v32 = vrot.slane %v302_v26, %v1813_v42  ;;  %v1120_v26 = vsel %vm635_vm9, %v1119_v60, %v1115_v59 }
 0x18f   :  { %v977_v1 = vsel %vm656_vm13, %v976_v56, %v972_v58 }
 0x190   :  { %v392_v29 = vpop.xlane.xlu1 %391  ;;  %v903_v61 = vsel %vm663_vm14, %v902_v32, %v898_v33 }
 0x191   :  { %v362_v31 = vpop.xlane.xlu0 %361  ;;  %v1124_v15 = vrot.slane %v392_v29, %v1751_v20 }
 0x192   :  { %v1050_v2 = vrot.slane %v362_v31, %v1771_v48 }
 0x193   :  { %v1125_v31 = vsel %vm642_vm11, %v1124_v15, %v1120_v26 }
 0x194   :  { %v304_v18 = vpop.xlane.xlu1 %303  ;;  %v1051_v19 = vsel %vm649_vm12, %v1050_v2, %v1046_v23 }
 0x195   :  { %v1857_v63 = vpop.xlane.xlu0 %421  ;;  %v907_v36 = vrot.slane %v304_v18, %v1833_v62 }
 0x196   :  { %v1198_v11 = vrot.slane %v1857_v63, %v1727_v39  ;;  %v1194_v63 = vsel %vm628_vm8, %v1193_v41, %v1189_v47 }
 0x197   :  { %v908_v37 = vsel %vm670_vm15, %v907_v36, %v903_v61 }
 0x198   :  { %v1230_v40 = vsel %vm1229_vm2, %v908_v37, %v1228_v24  ;;  %v364_v44 = vpop.xlane.xlu1 %363  ;;  %v1199_v37 = vsel %vm635_vm9, %v1198_v11, %v1194_v63 }
 0x199   :  { %v334_v46 = vpop.xlane.xlu0 %333  ;;  %v1055_v8 = vrot.slane %v364_v44, %v1791_v14 }
 0x19a   :  { %v981_v54 = vrot.slane %v334_v46, %v1813_v42 }
 0x19b   :  { %v1056_v9 = vsel %vm656_vm13, %v1055_v8, %v1051_v19 }
 0x19c   :  { %v424_v35 = vpop.xlane.xlu1 %423  ;;  %v982_v4 = vsel %vm663_vm14, %v981_v54, %v977_v1 }
 0x19d   :  { %v394_v51 = vpop.xlane.xlu0 %393  ;;  %v1203_v17 = vrot.slane %v424_v35, %v1751_v20 }
 0x19e   :  { %v1129_v53 = vrot.slane %v394_v51, %v1771_v48 }
 0x19f   :  { %v1204_v44 = vsel %vm642_vm11, %v1203_v17, %v1199_v37 }
 0x1a0   :  { %v366_v45 = vpop.xlane.xlu1 %365  ;;  %v1130_v32 = vsel %vm649_vm12, %v1129_v53, %v1125_v31 }
 0x1a1   :  { %v336_v0 = vpop.xlane.xlu0 %335  ;;  %v1060_v12 = vrot.slane %v366_v45, %v1813_v42 }
 0x1a2   :  { %v986_v57 = vrot.slane %v336_v0, %v1833_v62 }
 0x1a3   :  { %v1061_v28 = vsel %vm663_vm14, %v1060_v12, %v1056_v9 }
 0x1a4   :  { %v987_v27 = vsel %vm670_vm15, %v986_v57, %v982_v4  ;;  %v426_v5 = vpop.xlane.xlu1 %425 }
 0x1a5   :  { %v1232_v10 = vsel %vm1231_vm3, %v987_v27, %v1230_v40  ;;  %v396_v6 = vpop.xlane.xlu0 %395  ;;  %v1208_v16 = vrot.slane %v426_v5, %v1771_v48 }
 0x1a6   :  { %v1134_v24 = vrot.slane %v396_v6, %v1791_v14 }
 0x1a7   :  { %v1209_v48 = vsel %vm649_vm12, %v1208_v16, %v1204_v44 }
 0x1a8   :  { %v398_v21 = vpop.xlane.xlu1 %397  ;;  %v1135_v36 = vsel %vm656_vm13, %v1134_v24, %v1130_v32 }
 0x1a9   :  { %v368_v22 = vpop.xlane.xlu0 %367  ;;  %v1139_v29 = vrot.slane %v398_v21, %v1813_v42 }
 0x1aa   :  { %v1065_v25 = vrot.slane %v368_v22, %v1833_v62 }
 0x1ab   :  { %v1140_v20 = vsel %vm663_vm14, %v1139_v29, %v1135_v36 }
 0x1ac   :  { %v1066_v38 = vsel %vm670_vm15, %v1065_v25, %v1061_v28  ;;  %v400_v30 = vpop.xlane.xlu1 %399 }
 0x1ad   :  { %v428_v18 = vpop.xlane.xlu0 %427  ;;  %v1234_v33 = vsel %vm1233_vm4, %v1066_v38, %v1232_v10  ;;  %v1144_v39 = vrot.slane %v400_v30, %v1833_v62 }
 0x1ae   :  { %v1213_v61 = vrot.slane %v428_v18, %v1791_v14 }
 0x1af   :  { %v1145_v40 = vsel %vm670_vm15, %v1144_v39, %v1140_v20 }
 0x1b0   :  { %v432_v52 = vpop.xlane.xlu1 %431  ;;  %v1236_v49 = vsel %vm1235_vm5, %v1145_v40, %v1234_v33  ;;  %v1214_v51 = vsel %vm656_vm13, %v1213_v61, %v1209_v48 }
 0x1b1   :  { %v430_v46 = vpop.xlane.xlu0 %429  ;;  %v1223_v35 = vrot.slane %v432_v52, %v1833_v62 }
 0x1b2   :  { %v1218_v50 = vrot.slane %v430_v46, %v1813_v42 }
 0x1b4   :  { %v1219_v14 = vsel %vm663_vm14, %v1218_v50, %v1214_v51 }
 0x1b5   :  { %v1224_v56 = vsel %vm670_vm15, %v1223_v35, %v1219_v14 }
 0x1b6   :  { %v1238_v54 = vsel %vm1237_vm6, %v1224_v56, %v1236_v49 }
 0x1b7   :  { %1407 = vmatmul.mubr.f32.vlgmr.msra.gmra.mrb[0].mxu0 %v1238_v54 }
 0x28a   :  { %v1335_v58 = vpop.f32.mrb[0].mxu0 }
 0x28b   :  { %v1336_v45 = vadd.f32 %v1356_v55, %v1335_v58  ;;  %v1408_v42 = vpop.f32.mrb[1].mxu0 }
 0x28d   :  { %1339 = vst [vmem:[#allocation8] sm:$0xff] %v1336_v45 }
 0x28e   :  { %1496 = shalt.err (!%p1493_p6)
}
 0x28f   :  { %s1497_s16 = scalar_lea.hbm %s1944_s3, 128 }
 0x290   :  { %p1498_p7 = scmp.ne.s32.totalorder %s1944_s3, %s1497_s16  ;;  %p1501_p8 = scmp.lt.u32.totalorder %s1497_s16, %s1944_s3 }
 0x292   :  { %p1503_p9 = pnand %p1501_p8, %p1498_p7 }
 0x294   :  { %1506 = shalt.err (!%p1503_p9)
}
 0x295   :  { %1349 = dma.vmem_to_hbm [thread:$0]  %s1347_s12, 128, %s1944_s3, [#allocation5]  }
 0x296   :  { %1511 = dma.done.wait [#allocation5], 128  }
 0x297   :  { %1512 = vsyncadd [#allocation5], 4294967168 }
 0x298   :  { %1353 = vsyncpa [#allocation4], 1 }
 0x299   :  { %1354 = vsyncpa [#allocation7], 1 }
 0x29a   :  { %1355 = vsyncpa [#allocation5], 1 }

</bundles_post_ra>
